<compile_context>
chip_gen: v7x
topology: tpu7x:2x2x1
jax: 0.10.0
libtpu: 0.0.40
codegen_flags: <defaults>
</compile_context>

<pallas_src>
import jax
import jax.numpy as jnp
from jax.experimental import pallas as pl
from jax.experimental.pallas import tpu as pltpu


def _round_up(x, m):
    return (x + m - 1) // m * m


def _mlp_modulator_kernel(x_ref, h_ref, w2_ref, b2_ref, o_ref):
    # y = relu(h @ w2 + b2); mods = elu(y) + 1 == y + 1 exactly because y >= 0
    # after the ReLU (the exp branch of elu is dead code -> no EUP work).
    y = jnp.dot(h_ref[...], w2_ref[...], preferred_element_type=jnp.float32)
    y = jnp.maximum(y + b2_ref[...].astype(jnp.float32), 0.0)
    mods = y + 1.0
    # Multiply in f32, cast only at the store.
    o_ref[...] = (x_ref[...].astype(jnp.float32) * mods).astype(o_ref.dtype)


def mlp_modulate(x, behavior, w1, b1, w2, b2, *, block_b=512, block_n=None):
    """MLP modulator forward: x * (elu(relu(relu(behavior@w1+b1)@w2+b2)) + 1).

    x:        [B, neurons]
    behavior: [B, C_in]
    w1:       [C_in, hidden]    (transposed from PyTorch's [hidden, C_in])
    b1:       [hidden]
    w2:       [hidden, neurons] (transposed from PyTorch's [neurons, hidden])
    b2:       [neurons]
    """
    B, neurons = x.shape
    hidden = w1.shape[1]

    # --- Tiny first layer: plain XLA (removes in-kernel h cache / pl.when). ---
    h = jnp.maximum(
        jnp.dot(behavior.astype(jnp.float32), w1.astype(jnp.float32),
                preferred_element_type=jnp.float32)
        + b1.astype(jnp.float32),
        0.0)
    h = h.astype(w2.dtype)  # matched MXU operand dtypes (bf16 or f32)

    # --- Chip-aware tile / VMEM budget. ---------------------------------------
    try:
        vmem_cap = pltpu.get_tpu_info().vmem_capacity_bytes
    except Exception:
        vmem_cap = 64 * 1024 * 1024  # conservative (v7x per-TC) fallback
    if block_n is None:
        block_n = 4096 if vmem_cap >= 128 * 1024 * 1024 else 2048
    vmem_limit = int(min(max(vmem_cap * 3 // 4, 32 * 1024 * 1024),
                         96 * 1024 * 1024))

    # Sublane-aligned batch tile, lane-dense neuron tile.
    tm = min(max(8, _round_up(block_b, 8)), _round_up(B, 8))
    tn = min(max(128, _round_up(block_n, 128)), _round_up(neurons, 128))
    grid = (pl.cdiv(B, tm), pl.cdiv(neurons, tn))

    # Pad ONLY the tiny per-neuron parameters to the tile boundary; zero-padded
    # columns give mods == 1 and are never written back for the edge tile.
    n_pad = grid[1] * tn
    w2_p = jnp.pad(w2, ((0, 0), (0, n_pad - neurons)))
    b2_p = jnp.pad(b2, ((0, n_pad - neurons),)).reshape(1, n_pad)

    itemsize = jnp.dtype(x.dtype).itemsize
    cost = pl.CostEstimate(
        flops=2 * B * neurons * hidden + 3 * B * neurons,
        transcendentals=0,
        bytes_accessed=2 * B * neurons * itemsize
        + B * hidden * jnp.dtype(h.dtype).itemsize
        + int(w2_p.size) * jnp.dtype(w2.dtype).itemsize,
    )

    return pl.pallas_call(
        _mlp_modulator_kernel,
        out_shape=jax.ShapeDtypeStruct((B, neurons), x.dtype),
        grid_spec=pltpu.PrefetchScalarGridSpec(
            num_scalar_prefetch=0,
            grid=grid,
            in_specs=[
                pl.BlockSpec((tm, tn), lambda i, j: (i, j)),       # x
                pl.BlockSpec((tm, hidden), lambda i, j: (i, 0)),   # h
                pl.BlockSpec((hidden, tn), lambda i, j: (0, j)),   # w2
                pl.BlockSpec((1, tn), lambda i, j: (0, j)),        # b2
            ],
            out_specs=pl.BlockSpec((tm, tn), lambda i, j: (i, j)),
        ),
        compiler_params=pltpu.CompilerParams(
            dimension_semantics=("parallel", "parallel"),
            vmem_limit_bytes=vmem_limit,
        ),
        cost_estimate=cost,
    )(x, h, w2_p, b2_p)


def _reference(x, behavior, w1, b1, w2, b2):
    h = jnp.maximum(behavior @ w1 + b1, 0.0)
    y = jnp.maximum(h @ w2 + b2, 0.0)
    mods = jnp.where(y > 0.0, y, jnp.exp(y) - 1.0) + 1.0   # true elu(y) + 1
    return x * mods


if __name__ == "__main__":
    key = jax.random.PRNGKey(0)

    # --- Case 1: module default-ish tiny shape (single, ragged tile) ----------
    # input_channels=3, hidden_channels=10 are the nn.Module defaults.
    B, C_IN, HIDDEN, NEURONS = 8, 3, 10, 16
    kx, kb, kw1, kb1, kw2, kb2 = jax.random.split(key, 6)
    x = jax.random.normal(kx, (B, NEURONS), dtype=jnp.float32)
    behavior = jax.random.normal(kb, (B, C_IN), dtype=jnp.float32)
    w1 = jax.random.normal(kw1, (C_IN, HIDDEN), jnp.float32) * jnp.sqrt(2.0 / (C_IN + HIDDEN))
    b1 = jax.random.normal(kb1, (HIDDEN,), jnp.float32) * 0.01
    w2 = jax.random.normal(kw2, (HIDDEN, NEURONS), jnp.float32) * jnp.sqrt(2.0 / (HIDDEN + NEURONS))
    b2 = jax.random.normal(kb2, (NEURONS,), jnp.float32) * 0.01

    out = jax.block_until_ready(mlp_modulate(x, behavior, w1, b1, w2, b2))
    ref = _reference(x, behavior, w1, b1, w2, b2)
    assert out.shape == (B, NEURONS)
    assert jnp.allclose(out, ref, atol=1e-5, rtol=1e-5)

    # --- Case 2: multi-tile grid with ragged edges on both axes ---------------
    B2, N2 = 40, 300
    kx2, kb2_, kw2_ = jax.random.split(kx, 3)
    x2 = jax.random.normal(kx2, (B2, N2), dtype=jnp.float32)
    beh2 = jax.random.normal(kb2_, (B2, C_IN), dtype=jnp.float32)
    w2b = jax.random.normal(kw2_, (HIDDEN, N2), jnp.float32) * jnp.sqrt(2.0 / (HIDDEN + N2))
    b2b = jnp.zeros((N2,), jnp.float32) + 0.05

    out2 = jax.block_until_ready(
        mlp_modulate(x2, beh2, w1, b1, w2b, b2b, block_b=16, block_n=128))
    ref2 = _reference(x2, beh2, w1, b1, w2b, b2b)
    assert out2.shape == (B2, N2)
    assert jnp.allclose(out2, ref2, atol=1e-5, rtol=1e-5)

    print("KERNEL_OK")
</pallas_src>

<mosaic_0001>
module attributes {stable_mosaic.version = 11 : i64} {
  func.func @_mlp_modulator_kernel(%arg0: i32, %arg1: i32, %arg2: memref<8x128xf32, #tpu.memory_space<vmem>>, %arg3: memref<8x10xf32, #tpu.memory_space<vmem>>, %arg4: memref<10x128xf32, #tpu.memory_space<vmem>>, %arg5: memref<1x128xf32, #tpu.memory_space<vmem>>, %arg6: memref<8x128xf32, #tpu.memory_space<vmem>>) attributes {dimension_semantics = [#tpu.dimension_semantics<parallel>, #tpu.dimension_semantics<parallel>], iteration_bounds = array<i64: 1, 1>, scalar_prefetch = 0 : i64, scratch_operands = 0 : i64, tpu.core_type = #tpu.core_type<tc>, window_params = [{transform_indices = @transform_0, window_bounds = array<i64: 8, 128>}, {transform_indices = @transform_1, window_bounds = array<i64: 8, 10>}, {transform_indices = @transform_2, window_bounds = array<i64: 10, 128>}, {transform_indices = @transform_3, window_bounds = array<i64: 1, 128>}, {transform_indices = @transform_4, window_bounds = array<i64: 8, 128>}]} {
    %c0 = arith.constant 0 : index
    %c0_0 = arith.constant 0 : index
    %0 = vector.load %arg3[%c0, %c0_0] : memref<8x10xf32, #tpu.memory_space<vmem>>, vector<8x10xf32>
    %c0_1 = arith.constant 0 : index
    %c0_2 = arith.constant 0 : index
    %1 = vector.load %arg4[%c0_1, %c0_2] : memref<10x128xf32, #tpu.memory_space<vmem>>, vector<10x128xf32>
    %cst = arith.constant dense<0.000000e+00> : vector<8x128xf32>
    %2 = tpu.matmul %0, %1, %cst {dimension_numbers = #tpu.dot_dimension_numbers<[1], [0], [0], [1], [0, 0, 1, 1], [], []>} : vector<8x10xf32>, vector<10x128xf32>, vector<8x128xf32> -> vector<8x128xf32>
    %c0_3 = arith.constant 0 : index
    %c0_4 = arith.constant 0 : index
    %3 = vector.load %arg5[%c0_3, %c0_4] : memref<1x128xf32, #tpu.memory_space<vmem>>, vector<1x128xf32>
    %4 = vector.broadcast %3 : vector<1x128xf32> to vector<8x128xf32>
    %5 = arith.addf %2, %4 : vector<8x128xf32>
    %cst_5 = arith.constant 0.000000e+00 : f32
    %6 = vector.broadcast %cst_5 : f32 to vector<8x128xf32>
    %7 = arith.maximumf %5, %6 : vector<8x128xf32>
    %cst_6 = arith.constant 1.000000e+00 : f32
    %8 = vector.broadcast %cst_6 : f32 to vector<8x128xf32>
    %9 = arith.addf %7, %8 : vector<8x128xf32>
    %c0_7 = arith.constant 0 : index
    %c0_8 = arith.constant 0 : index
    %10 = vector.load %arg2[%c0_7, %c0_8] : memref<8x128xf32, #tpu.memory_space<vmem>>, vector<8x128xf32>
    %11 = arith.mulf %10, %9 : vector<8x128xf32>
    %c0_9 = arith.constant 0 : index
    %c0_10 = arith.constant 0 : index
    %12 = vector.load %arg6[%c0_9, %c0_10] : memref<8x128xf32, #tpu.memory_space<vmem>>, vector<8x128xf32>
    tpu.vector_store %arg6[%c0_9, %c0_10], %11 {strides = array<i32>} : memref<8x128xf32, #tpu.memory_space<vmem>>, vector<8x128xf32>,
    return
  }
  func.func @transform_0(%arg0: i32, %arg1: i32) -> (i32, i32) {
    %c0_i32 = arith.constant 0 : i32
    return %arg0, %arg1 : i32, i32
  }
  func.func @transform_1(%arg0: i32, %arg1: i32) -> (i32, i32) {
    %c0_i32 = arith.constant 0 : i32
    %c0_i32_0 = arith.constant 0 : i32
    return %arg0, %c0_i32 : i32, i32
  }
  func.func @transform_2(%arg0: i32, %arg1: i32) -> (i32, i32) {
    %c0_i32 = arith.constant 0 : i32
    %c0_i32_0 = arith.constant 0 : i32
    return %c0_i32, %arg1 : i32, i32
  }
  func.func @transform_3(%arg0: i32, %arg1: i32) -> (i32, i32) {
    %c0_i32 = arith.constant 0 : i32
    %c0_i32_0 = arith.constant 0 : i32
    return %c0_i32, %arg1 : i32, i32
  }
  func.func @transform_4(%arg0: i32, %arg1: i32) -> (i32, i32) {
    %c0_i32 = arith.constant 0 : i32
    return %arg0, %arg1 : i32, i32
  }
}

</mosaic_0001>

<bundles_post_ra>
// kernel: tpu_custom_call.1
= control target key start
LH: loop header
LB: loop body
LE: loop exit
PB: predicated region body
PF: predicated region fallthrough
CT: control target
= control target key end

     0   :  { %9 = vsyncpa [#allocation3], 0  ;;  %s371_s0 = inlined_call_operand.hbm [shape: f32[8,16], index: 0, kind: input, shape index: {}]   ;;  %s372_s1 = inlined_call_operand.hbm [shape: f32[8,10], index: 1, kind: input, shape index: {}]   ;;  %s373_s2 = inlined_call_operand.hbm [shape: f32[10,128], index: 2, kind: input, shape index: {}]   ;;  %s374_s3 = inlined_call_operand.vmem [shape: f32[1,128], index: 3, kind: input, shape index: {}]   ;;  %s375_s4 = inlined_call_operand.hbm [shape: f32[8,16], index: 4, kind: output, shape index: {}]  }
   0x1   :  { %10 = vsyncpa [#allocation6], 0 }
   0x2   :  { %11 = vsyncpa [#allocation4], 0  ;;  %s285_s15 = smov [#allocation5]   ;;  %s286_s17 = smov [#allocation2]  }
   0x3   :  { %s28_s16 = sshll.u32 %s285_s15, 4  ;;  %s18_s18 = sshll.u32 %s286_s17, 4  ;;  %s29_s16 = int_to_ptr.vmem [resolvable:$true] %s28_s16  ;;  %s19_s18 = int_to_ptr.vmem [resolvable:$true] %s18_s18 }
   0x4   :  { %s191_s21 = scalar_lea.hbm %s372_s1, 128 }
   0x5   :  { %p192_p0 = scmp.ne.s32.totalorder %s372_s1, %s191_s21  ;;  %p195_p1 = scmp.lt.u32.totalorder %s191_s21, %s372_s1 }
   0x7   :  { %p197_p2 = pnand %p195_p1, %p192_p0 }
   0x9   :  { %200 = shalt.err (!%p197_p2)
}
   0xa   :  { %s201_s26 = scalar_lea.vmem %s29_s16, 128  ;;  %p206_p4 = scmp.lt.s32.totalorder %s29_s16, %s29_s16 }
   0xb   :  { %p202_p3 = scmp.ne.s32.totalorder %s29_s16, %s201_s26  ;;  %p207_p5 = scmp.lt.s32.totalorder %s201_s26, %s201_s26 }
   0xd   :  { %p208_p6 = por %p207_p5, %p206_p4 }
   0xf   :  { %p209_p7 = pnand %p208_p6, %p202_p3 }
  0x11   :  { %212 = shalt.err (!%p209_p7)
}
  0x12   :  { %31 = dma.hbm_to_vmem [thread:$0]  %s372_s1, 128, %s29_s16, [#allocation6]  }
  0x13   :  { %s213_s5 = scalar_lea.hbm %s371_s0, 128 }
  0x14   :  { %p214_p8 = scmp.ne.s32.totalorder %s371_s0, %s213_s5  ;;  %p217_p9 = scmp.lt.u32.totalorder %s213_s5, %s371_s0 }
  0x16   :  { %p219_p10 = pnand %p217_p9, %p214_p8 }
  0x18   :  { %222 = shalt.err (!%p219_p10)
}
  0x19   :  { %s223_s10 = scalar_lea.vmem %s19_s18, 128  ;;  %p228_p12 = scmp.lt.s32.totalorder %s19_s18, %s19_s18 }
  0x1a   :  { %p224_p11 = scmp.ne.s32.totalorder %s19_s18, %s223_s10  ;;  %p229_p13 = scmp.lt.s32.totalorder %s223_s10, %s223_s10 }
  0x1c   :  { %p230_p0 = por %p229_p13, %p228_p12 }
  0x1e   :  { %p231_p1 = pnand %p230_p0, %p224_p11 }
  0x20   :  { %234 = shalt.err (!%p231_p1)
}
  0x21   :  { %21 = dma.hbm_to_vmem [thread:$0]  %s371_s0, 128, %s19_s18, [#allocation3]  }
  0x22   :  { %s287_s12 = smov [#allocation7]   ;;  %s235_s16 = scalar_lea.hbm %s373_s2, 256 }
  0x23   :  { %s37_s13 = sshll.u32 %s287_s12, 4  ;;  %p236_p2 = scmp.ne.s32.totalorder %s373_s2, %s235_s16  ;;  %s38_s13 = int_to_ptr.vmem [resolvable:$true] %s37_s13 }
  0x24   :  { %p239_p3 = scmp.lt.u32.totalorder %s235_s16, %s373_s2 }
  0x26   :  { %p241_p4 = pnand %p239_p3, %p236_p2 }
  0x28   :  { %244 = shalt.err (!%p241_p4)
}
  0x29   :  { %s245_s22 = scalar_lea.vmem %s38_s13, 256  ;;  %p250_p6 = scmp.lt.s32.totalorder %s38_s13, %s38_s13 }
  0x2a   :  { %p246_p5 = scmp.ne.s32.totalorder %s38_s13, %s245_s22  ;;  %p251_p7 = scmp.lt.s32.totalorder %s245_s22, %s245_s22 }
  0x2c   :  { %p252_p8 = por %p251_p7, %p250_p6 }
  0x2e   :  { %p253_p9 = pnand %p252_p8, %p246_p5 }
  0x30   :  { %256 = shalt.err (!%p253_p9)
}
  0x31   :  { %s288_s0 = smov 128   ;;  %s289_s18 = smov 8  }
  0x32   :  { %43 = dma.hbm_to_vmem [thread:$0]  %s373_s2, 256, %s38_s13, [#allocation6], %s288_s0, %s288_s0, %s289_s18  }
  0x33   :  { %279 = dma.done.wait [#allocation3], 128  }
  0x34   :  { %280 = vsyncadd [#allocation3], 4294967168 }
  0x35   :  { %281 = dma.done.wait [#allocation6], 384  }
  0x36   :  { %282 = vsyncadd [#allocation6], 4294966912  ;;  %v290_v0 = vmov 0.0|0.0   ;;  %vm291_vm0 = vmmov 0   ;;  %v292_v1 = vmov 0.0   ;;  %vm69_vm1 = vcmask 1041408  }
  0x37   :  { %177 = vmatprep.subr.bf16.mxu0 %v290_v0  ;;  %174 = vmatprep.mubr.msk.f32.mxu0 %vm291_vm0, %v292_v1  ;;  %v56_v2 = vld [vmem:[#allocation7] sm:$0xff]  ;;  %v57_v3 = vld [vmem:[#allocation7 + $0x8] sm:$0x3]  ;;  %vm293_vm2 = vmmov 1   ;;  %v55_v5 = vld [vmem:[#allocation5] sm:$0xff]  ;;  %vm65_vm4 = vcmask 80896  }
  0x38   :  { %vm179_vm3 = vmpackc.low %vm69_vm1, %vm293_vm2  ;;  %v178_v4 = vpack.c.bf16 %v57_v3, %v56_v2  ;;  %v164_v6 = vld [vmem:[%s374_s3] ss:$0 sm:$0xff]  ;;  %s294_s26 = smov [#allocation8]  }
  0x39   :  { %v145_v11 = vld [vmem:[#allocation2] sm:$0xff]  ;;  %s154_s27 = sshll.u32 %s294_s26, 4  ;;  %s155_s27 = int_to_ptr.vmem [resolvable:$true] %s154_s27 }
  0x3a   :  { %180 = vmatpush3.bf16.msk.msra.mxu0 %vm179_vm3, %v178_v4  ;;  %s257_s28 = scalar_lea.vmem %s155_s27, 128  ;;  %p262_p11 = scmp.lt.s32.totalorder %s155_s27, %s155_s27 }
  0x3b   :  { %p258_p10 = scmp.ne.s32.totalorder %s155_s27, %s257_s28  ;;  %p263_p12 = scmp.lt.s32.totalorder %s257_s28, %s257_s28 }
  0x3d   :  { %175 = vmatmul.mubr.msk.f32.vlgmr.msra.gmra.mrb[0].mxu0 %vm65_vm4, %v55_v5  ;;  %p264_p13 = por %p263_p12, %p262_p11 }
  0x3f   :  { %p265_p0 = pnand %p264_p13, %p258_p10 }
 0x110   :  { %v139_v7 = vpop.f32.mrb[0].mxu0 }
 0x111   :  { %v140_v8 = vadd.f32 %v164_v6, %v139_v7  ;;  %v176_v9 = vpop.f32.mrb[1].mxu0 }
 0x113   :  { %v143_v10 = vmax.f32 %v140_v8, 0.0 }
 0x115   :  { %v144_v12 = vadd.f32 1.0, %v143_v10 }
 0x117   :  { %v146_v13 = vmul.f32 %v145_v11, %v144_v12 }
 0x119   :  { %147 = vst [vmem:[#allocation8] sm:$0xff] %v146_v13 }
 0x11a   :  { %268 = shalt.err (!%p265_p0)
}
 0x11b   :  { %s269_s30 = scalar_lea.hbm %s375_s4, 128 }
 0x11c   :  { %p270_p1 = scmp.ne.s32.totalorder %s375_s4, %s269_s30  ;;  %p273_p2 = scmp.lt.u32.totalorder %s269_s30, %s375_s4 }
 0x11e   :  { %p275_p3 = pnand %p273_p2, %p270_p1 }
 0x120   :  { %278 = shalt.err (!%p275_p3)
}
 0x121   :  { %157 = dma.vmem_to_hbm [thread:$0]  %s155_s27, 128, %s375_s4, [#allocation4]  }
 0x122   :  { %283 = dma.done.wait [#allocation4], 128  }
 0x123   :  { %284 = vsyncadd [#allocation4], 4294967168 }
 0x124   :  { %161 = vsyncpa [#allocation3], 1 }
 0x125   :  { %162 = vsyncpa [#allocation6], 1 }
 0x126   :  { %163 = vsyncpa [#allocation4], 1 }

</bundles_post_ra>
